<compile_context>
chip_gen: v7x
topology: tpu7x:2x2x1
jax: 0.10.0
libtpu: 0.0.40
codegen_flags: <defaults>
</compile_context>

<pallas_src>
import functools

import jax
import jax.numpy as jnp
from jax.experimental import pallas as pl
from jax.experimental.pallas import tpu as pltpu


def _conv_kernel(x_ref, w_ref, mask_ref, b_ref, o_ref, im_ref, *,
                 C, F, W, KH, KW, pad):
    """One batch element.

    x_ref   : (1, C, F*W)       flattened (unpadded) image, lane-dense
    w_ref   : (Cout, KH*KW*C)   2-D weight, tap-major / channel-minor
    mask_ref: (KH*KW, F*W)      0/1 edge-validity mask per tap
    b_ref   : (Cout, 1)         bias
    o_ref   : (1, Cout, F*W)    lane-dense output
    im_ref  : (KH*KW*C, F*W)    VMEM scratch: fused im2col block
    """
    FW = F * W
    x = x_ref[0]                      # (C, FW)
    masks = mask_ref[...]             # (KH*KW, FW)

    # Build the im2col block: each tap is a lane-roll of the flat image plus an
    # edge mask (this replaces host-side zero padding and misaligned slicing).
    for ky in range(KH):
        for kx in range(KW):
            t = ky * KW + kx
            s = (ky - pad) * W + (kx - pad)      # flat shift of this tap
            if s % FW == 0:
                shifted = x
            else:
                shifted = pltpu.roll(x, shift=(-s) % FW, axis=1)
            im_ref[t * C:(t + 1) * C, :] = shifted * masks[t:t + 1, :]

    # Single fused MXU matmul over K = KH*KW*C, f32 accumulation.
    acc = jnp.dot(w_ref[...], im_ref[...], preferred_element_type=jnp.float32)
    acc = acc + b_ref[...]                        # (Cout, 1) broadcast over lanes
    o_ref[0] = acc.astype(o_ref.dtype)


def conv3d_to_conv2d_forward(x, weight, bias, *, padding):
    """x: (b, c, f, h, w); weight: (Cout, Cin, KH, KW); bias: (Cout,)."""
    b, c, f, h, w = x.shape
    Cout, Cin, KH, KW = weight.shape
    assert Cin == c
    F, W_ = f, h * w
    FW = F * W_
    # stride=1 / 'same'-style padding is required for the module's .view() to be valid.
    assert KH == 2 * padding + 1 and KW == 2 * padding + 1

    # Lane-dense flattened input (row-major reshape: no extra HBM pass).
    x2 = x.reshape(b, c, FW)

    # 2-D weight: tap-major, channel-minor  ->  w2[co, t*Cin + ci] = weight[co, ci, ky, kx].
    w2 = jnp.transpose(weight, (0, 2, 3, 1)).reshape(Cout, KH * KW * Cin)
    bias2 = bias.reshape(Cout, 1)

    # Per-tap 0/1 edge masks in flat coordinates (replaces the zero padding).
    pos = jnp.arange(FW, dtype=jnp.int32)
    yy, xx = pos // W_, pos % W_
    mask_rows = []
    for ky in range(KH):
        for kx in range(KW):
            dy, dx = ky - padding, kx - padding
            mask_rows.append((yy + dy >= 0) & (yy + dy < F) &
                             (xx + dx >= 0) & (xx + dx < W_))
    masks = jnp.stack(mask_rows).astype(x.dtype)          # (KH*KW, FW)

    kernel = functools.partial(
        _conv_kernel, C=c, F=F, W=W_, KH=KH, KW=KW, pad=padding)

    itemsize = jnp.dtype(x.dtype).itemsize
    cost = pl.CostEstimate(
        flops=2 * b * Cout * Cin * KH * KW * FW,
        transcendentals=0,
        bytes_accessed=(x2.size + w2.size + masks.size + bias2.size
                        + b * Cout * FW) * itemsize,
    )

    out = pl.pallas_call(
        kernel,
        out_shape=jax.ShapeDtypeStruct((b, Cout, FW), x.dtype),
        grid_spec=pltpu.PrefetchScalarGridSpec(
            num_scalar_prefetch=0,
            grid=(b,),
            in_specs=[
                pl.BlockSpec((1, c, FW), lambda i: (i, 0, 0)),
                pl.BlockSpec((Cout, KH * KW * Cin), lambda i: (0, 0)),
                pl.BlockSpec((KH * KW, FW), lambda i: (0, 0)),
                pl.BlockSpec((Cout, 1), lambda i: (0, 0)),
            ],
            out_specs=pl.BlockSpec((1, Cout, FW), lambda i: (i, 0, 0)),
            scratch_shapes=[pltpu.VMEM((KH * KW * c, FW), x.dtype)],
        ),
        compiler_params=pltpu.CompilerParams(
            dimension_semantics=("parallel",),
        ),
        cost_estimate=cost,
    )(x2, w2, masks, bias2)

    # Final view back to (b, Cout, f, h, w) — free row-major reshape.
    return out.reshape(b, Cout, f, h, w)


if __name__ == "__main__":
    # Module config (Conv2d must preserve spatial size, as the forward's .view()
    # requires): kernel=3, stride=1, padding=1.
    in_channels, out_channels = 4, 8
    kernel_size, stride, padding = 3, 1, 1
    b, f, h, w = 2, 8, 8, 8

    key = jax.random.PRNGKey(0)
    kx_, kw_, kb_ = jax.random.split(key, 3)

    x = jax.random.normal(kx_, (b, in_channels, f, h, w), jnp.float32)
    fan_in = in_channels * kernel_size * kernel_size
    weight = jax.random.normal(
        kw_, (out_channels, in_channels, kernel_size, kernel_size), jnp.float32
    ) * (1.0 / jnp.sqrt(fan_in))
    bias = jax.random.normal(kb_, (out_channels,), jnp.float32) * 0.1

    y = conv3d_to_conv2d_forward(x, weight, bias, padding=padding)
    y = jax.block_until_ready(y)

    # Pure-JAX reference of the PyTorch forward.
    x2d = x.reshape(b, in_channels, f, h * w)
    ref = jax.lax.conv_general_dilated(
        x2d, weight, window_strides=(stride, stride),
        padding=((padding, padding), (padding, padding)),
        dimension_numbers=("NCHW", "OIHW", "NCHW"),
    ) + bias.reshape(1, -1, 1, 1)
    ref = ref.reshape(b, out_channels, f, h, w)

    assert y.shape == (b, out_channels, f, h, w)
    err = float(jnp.max(jnp.abs(y - ref)))
    assert err < 5e-4, f"max abs error {err}"

    print("KERNEL_OK")
</pallas_src>

<mosaic_0001>
module attributes {stable_mosaic.version = 11 : i64} {
  func.func @_conv_kernel(%arg0: i32, %arg1: memref<1x4x512xf32, #tpu.memory_space<vmem>>, %arg2: memref<8x36xf32, #tpu.memory_space<vmem>>, %arg3: memref<9x512xf32, #tpu.memory_space<vmem>>, %arg4: memref<8x1xf32, #tpu.memory_space<vmem>>, %arg5: memref<1x8x512xf32, #tpu.memory_space<vmem>>, %arg6: memref<36x512xf32, #tpu.memory_space<vmem>>) attributes {dimension_semantics = [#tpu.dimension_semantics<parallel>], iteration_bounds = array<i64: 2>, scalar_prefetch = 0 : i64, scratch_operands = 1 : i64, tpu.core_type = #tpu.core_type<tc>, window_params = [{transform_indices = @transform_0, window_bounds = array<i64: 1, 4, 512>}, {pipeline_mode = #tpu.pipeline_mode<synchronous>, transform_indices = @transform_1, window_bounds = array<i64: 8, 36>}, {pipeline_mode = #tpu.pipeline_mode<synchronous>, transform_indices = @transform_2, window_bounds = array<i64: 9, 512>}, {pipeline_mode = #tpu.pipeline_mode<synchronous>, transform_indices = @transform_3, window_bounds = array<i64: 8, 1>}, {transform_indices = @transform_4, window_bounds = array<i64: 1, 8, 512>}]} {
    %c0 = arith.constant 0 : index
    %c0_0 = arith.constant 0 : index
    %c0_1 = arith.constant 0 : index
    %0 = vector.load %arg1[%c0, %c0_0, %c0_1] : memref<1x4x512xf32, #tpu.memory_space<vmem>>, vector<1x4x512xf32>
    %1 = vector.shape_cast %0 : vector<1x4x512xf32> to vector<4x512xf32>
    %c0_2 = arith.constant 0 : index
    %c0_3 = arith.constant 0 : index
    %2 = vector.load %arg3[%c0_2, %c0_3] : memref<9x512xf32, #tpu.memory_space<vmem>>, vector<9x512xf32>
    %c65_i32 = arith.constant 65 : i32
    %3 = tpu.dynamic_rotate %1 by %c65_i32 dim 1 : vector<4x512xf32>, i32 -> vector<4x512xf32>
    %4 = vector.extract_strided_slice %2 {offsets = [0, 0], sizes = [1, 512], strides = [1, 1]} : vector<9x512xf32> to vector<1x512xf32>
    %5 = vector.broadcast %4 : vector<1x512xf32> to vector<4x512xf32>
    %6 = arith.mulf %3, %5 : vector<4x512xf32>
    %c0_4 = arith.constant 0 : index
    %c0_5 = arith.constant 0 : index
    %7 = vector.load %arg6[%c0_4, %c0_5] : memref<36x512xf32, #tpu.memory_space<vmem>>, vector<4x512xf32>
    tpu.vector_store %arg6[%c0_4, %c0_5], %6 {strides = array<i32>} : memref<36x512xf32, #tpu.memory_space<vmem>>, vector<4x512xf32>,
    %c64_i32 = arith.constant 64 : i32
    %8 = tpu.dynamic_rotate %1 by %c64_i32 dim 1 : vector<4x512xf32>, i32 -> vector<4x512xf32>
    %9 = vector.extract_strided_slice %2 {offsets = [1, 0], sizes = [1, 512], strides = [1, 1]} : vector<9x512xf32> to vector<1x512xf32>
    %10 = vector.broadcast %9 : vector<1x512xf32> to vector<4x512xf32>
    %11 = arith.mulf %8, %10 : vector<4x512xf32>
    %c4 = arith.constant 4 : index
    %c0_6 = arith.constant 0 : index
    %12 = vector.load %arg6[%c4, %c0_6] : memref<36x512xf32, #tpu.memory_space<vmem>>, vector<4x512xf32>
    tpu.vector_store %arg6[%c4, %c0_6], %11 {strides = array<i32>} : memref<36x512xf32, #tpu.memory_space<vmem>>, vector<4x512xf32>,
    %c63_i32 = arith.constant 63 : i32
    %13 = tpu.dynamic_rotate %1 by %c63_i32 dim 1 : vector<4x512xf32>, i32 -> vector<4x512xf32>
    %14 = vector.extract_strided_slice %2 {offsets = [2, 0], sizes = [1, 512], strides = [1, 1]} : vector<9x512xf32> to vector<1x512xf32>
    %15 = vector.broadcast %14 : vector<1x512xf32> to vector<4x512xf32>
    %16 = arith.mulf %13, %15 : vector<4x512xf32>
    %c8 = arith.constant 8 : index
    %c0_7 = arith.constant 0 : index
    %17 = vector.load %arg6[%c8, %c0_7] : memref<36x512xf32, #tpu.memory_space<vmem>>, vector<4x512xf32>
    tpu.vector_store %arg6[%c8, %c0_7], %16 {strides = array<i32>} : memref<36x512xf32, #tpu.memory_space<vmem>>, vector<4x512xf32>,
    %c1_i32 = arith.constant 1 : i32
    %18 = tpu.dynamic_rotate %1 by %c1_i32 dim 1 : vector<4x512xf32>, i32 -> vector<4x512xf32>
    %19 = vector.extract_strided_slice %2 {offsets = [3, 0], sizes = [1, 512], strides = [1, 1]} : vector<9x512xf32> to vector<1x512xf32>
    %20 = vector.broadcast %19 : vector<1x512xf32> to vector<4x512xf32>
    %21 = arith.mulf %18, %20 : vector<4x512xf32>
    %c12 = arith.constant 12 : index
    %c0_8 = arith.constant 0 : index
    %22 = vector.load %arg6[%c12, %c0_8] : memref<36x512xf32, #tpu.memory_space<vmem>>, vector<4x512xf32>
    tpu.vector_store %arg6[%c12, %c0_8], %21 {strides = array<i32>} : memref<36x512xf32, #tpu.memory_space<vmem>>, vector<4x512xf32>,
    %23 = vector.extract_strided_slice %2 {offsets = [4, 0], sizes = [1, 512], strides = [1, 1]} : vector<9x512xf32> to vector<1x512xf32>
    %24 = vector.broadcast %23 : vector<1x512xf32> to vector<4x512xf32>
    %25 = arith.mulf %1, %24 : vector<4x512xf32>
    %c16 = arith.constant 16 : index
    %c0_9 = arith.constant 0 : index
    %26 = vector.load %arg6[%c16, %c0_9] : memref<36x512xf32, #tpu.memory_space<vmem>>, vector<4x512xf32>
    tpu.vector_store %arg6[%c16, %c0_9], %25 {strides = array<i32>} : memref<36x512xf32, #tpu.memory_space<vmem>>, vector<4x512xf32>,
    %c511_i32 = arith.constant 511 : i32
    %27 = tpu.dynamic_rotate %1 by %c511_i32 dim 1 : vector<4x512xf32>, i32 -> vector<4x512xf32>
    %28 = vector.extract_strided_slice %2 {offsets = [5, 0], sizes = [1, 512], strides = [1, 1]} : vector<9x512xf32> to vector<1x512xf32>
    %29 = vector.broadcast %28 : vector<1x512xf32> to vector<4x512xf32>
    %30 = arith.mulf %27, %29 : vector<4x512xf32>
    %c20 = arith.constant 20 : index
    %c0_10 = arith.constant 0 : index
    %31 = vector.load %arg6[%c20, %c0_10] : memref<36x512xf32, #tpu.memory_space<vmem>>, vector<4x512xf32>
    tpu.vector_store %arg6[%c20, %c0_10], %30 {strides = array<i32>} : memref<36x512xf32, #tpu.memory_space<vmem>>, vector<4x512xf32>,
    %c449_i32 = arith.constant 449 : i32
    %32 = tpu.dynamic_rotate %1 by %c449_i32 dim 1 : vector<4x512xf32>, i32 -> vector<4x512xf32>
    %33 = vector.extract_strided_slice %2 {offsets = [6, 0], sizes = [1, 512], strides = [1, 1]} : vector<9x512xf32> to vector<1x512xf32>
    %34 = vector.broadcast %33 : vector<1x512xf32> to vector<4x512xf32>
    %35 = arith.mulf %32, %34 : vector<4x512xf32>
    %c24 = arith.constant 24 : index
    %c0_11 = arith.constant 0 : index
    %36 = vector.load %arg6[%c24, %c0_11] : memref<36x512xf32, #tpu.memory_space<vmem>>, vector<4x512xf32>
    tpu.vector_store %arg6[%c24, %c0_11], %35 {strides = array<i32>} : memref<36x512xf32, #tpu.memory_space<vmem>>, vector<4x512xf32>,
    %c448_i32 = arith.constant 448 : i32
    %37 = tpu.dynamic_rotate %1 by %c448_i32 dim 1 : vector<4x512xf32>, i32 -> vector<4x512xf32>
    %38 = vector.extract_strided_slice %2 {offsets = [7, 0], sizes = [1, 512], strides = [1, 1]} : vector<9x512xf32> to vector<1x512xf32>
    %39 = vector.broadcast %38 : vector<1x512xf32> to vector<4x512xf32>
    %40 = arith.mulf %37, %39 : vector<4x512xf32>
    %c28 = arith.constant 28 : index
    %c0_12 = arith.constant 0 : index
    %41 = vector.load %arg6[%c28, %c0_12] : memref<36x512xf32, #tpu.memory_space<vmem>>, vector<4x512xf32>
    tpu.vector_store %arg6[%c28, %c0_12], %40 {strides = array<i32>} : memref<36x512xf32, #tpu.memory_space<vmem>>, vector<4x512xf32>,
    %c447_i32 = arith.constant 447 : i32
    %42 = tpu.dynamic_rotate %1 by %c447_i32 dim 1 : vector<4x512xf32>, i32 -> vector<4x512xf32>
    %43 = vector.extract_strided_slice %2 {offsets = [8, 0], sizes = [1, 512], strides = [1, 1]} : vector<9x512xf32> to vector<1x512xf32>
    %44 = vector.broadcast %43 : vector<1x512xf32> to vector<4x512xf32>
    %45 = arith.mulf %42, %44 : vector<4x512xf32>
    %c32 = arith.constant 32 : index
    %c0_13 = arith.constant 0 : index
    %46 = vector.load %arg6[%c32, %c0_13] : memref<36x512xf32, #tpu.memory_space<vmem>>, vector<4x512xf32>
    tpu.vector_store %arg6[%c32, %c0_13], %45 {strides = array<i32>} : memref<36x512xf32, #tpu.memory_space<vmem>>, vector<4x512xf32>,
    %c0_14 = arith.constant 0 : index
    %c0_15 = arith.constant 0 : index
    %47 = vector.load %arg2[%c0_14, %c0_15] : memref<8x36xf32, #tpu.memory_space<vmem>>, vector<8x36xf32>
    %c0_16 = arith.constant 0 : index
    %c0_17 = arith.constant 0 : index
    %48 = vector.load %arg6[%c0_16, %c0_17] : memref<36x512xf32, #tpu.memory_space<vmem>>, vector<36x512xf32>
    %cst = arith.constant dense<0.000000e+00> : vector<8x512xf32>
    %49 = tpu.matmul %47, %48, %cst {dimension_numbers = #tpu.dot_dimension_numbers<[1], [0], [0], [1], [0, 0, 1, 1], [], []>} : vector<8x36xf32>, vector<36x512xf32>, vector<8x512xf32> -> vector<8x512xf32>
    %c0_18 = arith.constant 0 : index
    %c0_19 = arith.constant 0 : index
    %50 = vector.load %arg4[%c0_18, %c0_19] : memref<8x1xf32, #tpu.memory_space<vmem>>, vector<8x1xf32>
    %51 = vector.broadcast %50 : vector<8x1xf32> to vector<8x512xf32>
    %52 = arith.addf %49, %51 : vector<8x512xf32>
    %c0_20 = arith.constant 0 : index
    %c0_21 = arith.constant 0 : index
    %c0_22 = arith.constant 0 : index
    %53 = vector.load %arg5[%c0_20, %c0_21, %c0_22] : memref<1x8x512xf32, #tpu.memory_space<vmem>>, vector<1x8x512xf32>
    %54 = vector.shape_cast %53 : vector<1x8x512xf32> to vector<8x512xf32>
    %55 = vector.shape_cast %52 : vector<8x512xf32> to vector<1x8x512xf32>
    tpu.vector_store %arg5[%c0_20, %c0_21, %c0_22], %55 {strides = array<i32>} : memref<1x8x512xf32, #tpu.memory_space<vmem>>, vector<1x8x512xf32>,
    return
  }
  func.func @transform_0(%arg0: i32) -> (i32, i32, i32) {
    %c0_i32 = arith.constant 0 : i32
    %c0_i32_0 = arith.constant 0 : i32
    %c0_i32_1 = arith.constant 0 : i32
    return %arg0, %c0_i32, %c0_i32_0 : i32, i32, i32
  }
  func.func @transform_1(%arg0: i32) -> (i32, i32) {
    %c0_i32 = arith.constant 0 : i32
    %c0_i32_0 = arith.constant 0 : i32
    %c0_i32_1 = arith.constant 0 : i32
    return %c0_i32, %c0_i32_0 : i32, i32
  }
  func.func @transform_2(%arg0: i32) -> (i32, i32) {
    %c0_i32 = arith.constant 0 : i32
    %c0_i32_0 = arith.constant 0 : i32
    %c0_i32_1 = arith.constant 0 : i32
    return %c0_i32, %c0_i32_0 : i32, i32
  }
  func.func @transform_3(%arg0: i32) -> (i32, i32) {
    %c0_i32 = arith.constant 0 : i32
    %c0_i32_0 = arith.constant 0 : i32
    %c0_i32_1 = arith.constant 0 : i32
    return %c0_i32, %c0_i32_0 : i32, i32
  }
  func.func @transform_4(%arg0: i32) -> (i32, i32, i32) {
    %c0_i32 = arith.constant 0 : i32
    %c0_i32_0 = arith.constant 0 : i32
    %c0_i32_1 = arith.constant 0 : i32
    return %arg0, %c0_i32, %c0_i32_0 : i32, i32, i32
  }
}

</mosaic_0001>

<bundles_post_ra>
// kernel: tpu_custom_call.1
= control target key start
LH: loop header
LB: loop body
LE: loop exit
PB: predicated region body
PF: predicated region fallthrough
CT: control target
= control target key end

     0   :  { %9 = vsyncpa [#allocation4], 0  ;;  %s1609_s0 = inlined_call_operand.hbm [shape: f32[2,4,512], index: 0, kind: input, shape index: {}]   ;;  %s1610_s1 = inlined_call_operand.vmem [shape: f32[8,36], index: 1, kind: input, shape index: {}]   ;;  %s1611_s2 = inlined_call_operand.hbm [shape: f32[9,512], index: 2, kind: input, shape index: {}]   ;;  %s1612_s3 = inlined_call_operand.vmem [shape: f32[8,1], index: 3, kind: input, shape index: {}]   ;;  %s1613_s4 = inlined_call_operand.hbm [shape: f32[2,8,512], index: 4, kind: output, shape index: {}]  }
   0x1   :  { %11 = vsyncpa [#allocation4 + $0x1], 0 }
   0x2   :  { %12 = vsyncpa [#allocation7], 0 }
   0x3   :  { %13 = vsyncpa [#allocation5], 0 }
   0x4   :  { %15 = vsyncpa [#allocation5 + $0x1], 0  ;;  %s1153_s15 = smov 0   ;;  %s1155_s16 = smov 0  }
   0x5   :  { %s1157_s17 = smov 0   ;;  %s1159_s18 = smov 0  }
   0x6 LB: > { %s1174_s19 = sadd.s32 4294967295, %s1114_s18   ;;  %s873_s20 = sadd.s32 4294967294, %s1114_s18   ;;  %s1114_s18 = sphi %s1159_s18, %s1633_s18   ;;  %s1110_s17 = sphi %s1157_s17, %s1632_s17   ;;  %s1106_s16 = sphi %s1155_s16, %s1631_s16   ;;  %s1102_s15 = sphi %s1153_s15, %s1630_s15  }
   0x7   : > { %p41_p0 = scmp.ne.s32.totalorder %s1106_s16, %s1102_s15  ;;  %p1614_p1 = scmp.eq.s32.totalorder %s1174_s19, 0 }
   0x8   : > { %p134_p3 = scmp.eq.s32.totalorder %s873_s20, 1  ;;  %p874_p5 = scmp.ge.s32.totalorder %s1114_s18, 1 }
   0x9   : > { %p1183_p4 = por %p1614_p1, %p41_p0  ;;  %p141_p7 = scmp.lt.s32.totalorder %s1114_s18, 3 }
   0xa   : > { %p1188_p6 = por %p134_p3, %p41_p0  ;;  %s1116_s24 = smov [#allocation6]  }
   0xb   : > { %s1617_s21 = scalar_select %p1183_p4, 1, 0 }
   0xc   : > { %s1618_s22 = scalar_select %p1188_p6, 1, 0 }
   0xd   : > { %p1193_p8 = pnand %p874_p5, %p141_p7  ;;  %s156_s25 = sshll.u32 %s1116_s24, 4  ;;  %s1197_s25 = int_to_ptr.vmem [resolvable:$true] %s156_s25 }
   0xe   : > { %s1209_s27 = sadd.s32 1, %s1114_s18   ;;  %s28_s28 = sadd.s32 1, %s1110_s17 }
   0xf   : > { %s1619_s23 = scalar_select %p1193_p8, 1, 0 }
  0x10   : > { %p925_p9 = pneg %p1193_p8  ;;  %s25_s29 = ssub.s32 %s1114_s18, %s1209_s27 }
  0x11   : > { %s986_s6 = scalar_lea.hbm %s1611_s2, 1024 }
  0x12   : > { %p1204_p11 = pnand %p925_p9, %p1614_p1  ;;  %p987_p12 = scmp.ne.s32.totalorder %s1611_s2, %s986_s6 }
  0x13   : > { %p993_p5 = scmp.lt.u32.totalorder %s986_s6, %s1611_s2 }
  0x14   : > { %p988_p13 = pneg %p1204_p11 }
  0x16   : > { %p989_p0 = pnand %p988_p13, %p987_p12 }
  0x18   : > { %p990_p3 = pneg %p989_p0 }
  0x1a   : > { %p995_p7 = pnand %p993_p5, %p990_p3 }
  0x1c   : > { %998 = shalt.err (!%p995_p7)
}
  0x1d   : > { %s999_s11 = scalar_lea.vmem %s1197_s25, 1024  ;;  %p1007_p2 = scmp.lt.s32.totalorder %s1197_s25, %s1197_s25 }
  0x1e   : > { %p1000_p9 = scmp.ne.s32.totalorder %s1197_s25, %s999_s11  ;;  %p1008_p6 = scmp.lt.s32.totalorder %s999_s11, %s999_s11 }
  0x20   : > { %p1002_p10 = pnand %p1000_p9, %p988_p13  ;;  %p1009_p4 = por %p1008_p6, %p1007_p2 }
  0x22   : > { %p1003_p1 = pneg %p1002_p10 }
  0x24   : > { %p1010_p8 = pnand %p1009_p4, %p1003_p1 }
  0x26   : > { %1013 = shalt.err (!%p1010_p8)
}
  0x27   : > { %s1117_s12 = smov 512   ;;  %s1118_s13 = smov 32  }
  0x28   : > { %928 = dma.hbm_to_vmem [thread:$0]  (!%p1204_p11), %s1611_s2, 1024, %s1197_s25, [#allocation7], %s1117_s12, %s1117_s12, %s1118_s13  }
  0x29   : > { %p26_p2 = scmp.eq.s32.totalorder %s25_s29, 0  ;;  %p35_p1 = scmp.ne.s32.totalorder %s1110_s17, %s1106_s16 }
  0x2a   : > { %p36_p4 = scmp.eq.s32.totalorder %s1114_s18, 0  ;;  %p938_p6 = scmp.lt.s32.totalorder %s1114_s18, 2 }
  0x2b   : > { %s1240_s24 = scalar_select %p26_p2, %s1110_s17, %s28_s28  }
  0x2c   : > { %p37_p8 = por %p36_p4, %p35_p1  ;;  %p1621_p10 = scmp.eq.s32.totalorder %s1174_s19, 1 }
  0x2d   : > { %s173_s5 = sand.u32 1, %s1110_s17   ;;  %s899_s6 = sshll.u32 %s1114_s18, 8 }
  0x2e   : > { %p1244_p12 = por %p1621_p10, %p35_p1  ;;  %s877_s7 = sshll.u32 %s173_s5, 4 }
  0x2f   : > { %s1253_s9 = scalar_lea.hbm %s1609_s0, %s899_s6  ;;  %s177_s25 = scalar_lea.vmem [#allocation3], %s877_s7 }
  0x30   : > { %s185_s28 = sshll.u32 %s177_s25, 4  ;;  %p1255_p11 = pnand %p938_p6, %p37_p8  ;;  %s1259_s28 = int_to_ptr.vmem [resolvable:$true] %s185_s28 }
  0x31   : > { %s174_s10 = scalar_lea.sflag [#allocation4], %s173_s5  ;;  %s1014_s11 = scalar_lea.hbm %s1253_s9, 256 }
  0x32   : > { %p1015_p13 = scmp.ne.s32.totalorder %s1253_s9, %s1014_s11  ;;  %p1016_p0 = pneg %p1255_p11 }
  0x33   : > { %s1019_s14 = scalar_lea.hbm %s1609_s0, 512  ;;  %p1020_p7 = scmp.lt.u32.totalorder %s1253_s9, %s1609_s0 }
  0x34   : > { %p1017_p3 = pnand %p1016_p0, %p1015_p13  ;;  %p1021_p9 = scmp.lt.u32.totalorder %s1019_s14, %s1014_s11 }
  0x35   : > { %p1023_p1 = scmp.lt.u32.totalorder %s1014_s11, %s1253_s9 }
  0x36   : > { %p1018_p5 = pneg %p1017_p3  ;;  %p1022_p2 = por %p1021_p9, %p1020_p7 }
  0x38   : > { %p1024_p4 = por %p1023_p1, %p1022_p2 }
  0x3a   : > { %p1025_p6 = pnand %p1024_p4, %p1018_p5 }
  0x3c   : > { %1028 = shalt.err (!%p1025_p6)
}
  0x3d   : > { %s1029_s5 = scalar_lea.vmem %s1259_s28, 256  ;;  %s1119_s7 = smov [#allocation3]  }
  0x3e   : > { %p1030_p8 = scmp.ne.s32.totalorder %s1259_s28, %s1029_s5  ;;  %s1034_s26 = sshll.u32 %s1119_s7, 4  ;;  %s1035_s26 = int_to_ptr.vmem [resolvable:$false] %s1034_s26 }
  0x3f   : > { %s1036_s8 = scalar_lea.vmem %s1035_s26, 512  ;;  %p1037_p3 = scmp.lt.s32.totalorder %s1259_s28, %s1035_s26 }
  0x40   : > { %p1032_p10 = pnand %p1030_p8, %p1016_p0  ;;  %p1038_p7 = scmp.lt.s32.totalorder %s1036_s8, %s1029_s5 }
  0x42   : > { %p1033_p13 = pneg %p1032_p10  ;;  %p1039_p9 = por %p1038_p7, %p1037_p3 }
  0x44   : > { %p1040_p2 = pnand %p1039_p9, %p1033_p13 }
  0x46   : > { %1043 = shalt.err (!%p1040_p2)
}
  0x47   : > { %932 = dma.hbm_to_vmem [thread:$0]  (!%p1255_p11), %s1253_s9, 256, %s1259_s28, %s174_s10  }
  0x48   : > { %p1624_p5 = scmp.ne.s32.totalorder %s1619_s23, 0 }
  0x49   : > { %s1289_s25 = sand.u32 (!%p1624_p5), 1, %s1106_s16   ;;  %p1625_p0 = scmp.ne.s32.totalorder (!%p1624_p5), %s1617_s21, 0 }
  0x4a   : > { %194 = sbr.rel (%p1624_p5) target bundleno = 488 (0x1e8), region = 36  ;;  %s881_s11 = sshll.u32 (!%p1624_p5), %s1289_s25, 4 }
  0x4b   : > { %s197_s12 = scalar_lea.sflag (!%p1624_p5), [#allocation4], %s1289_s25  ;;  %s200_s13 = scalar_lea.vmem (!%p1624_p5), [#allocation3], %s881_s11 }
  0x51   : > { %1089 = dma.done.wait (%p1625_p0), %s197_s12, 256  }
  0x52   : > { %1091 = vsyncadd (%p1625_p0), %s197_s12, 4294967040  ;;  %p1626_p1 = scmp.eq.s32.totalorder %s1174_s19, 0 }
  0x54   : > { %1093 = dma.done.wait (%p1626_p1), [#allocation7], 1024   ;;  %p1627_p11 = pmov %p1626_p1 }
  0x55   : > { %v253_v0 = vlaneseq  ;;  %v1308_v6 = vld [vmem:[%s200_s13 + $0x8] sm:$0xff]  ;;  %v1310_v7 = vld [vmem:[%s200_s13] sm:$0xff]  ;;  %s1120_s21 = smov 64   ;;  %s1121_s23 = smov 1   ;;  %v1125_v56 = vmov 0.0   ;;  %v1126_v58 = vmov 0  }
  0x56   : > { %1095 = vsyncadd (%p1627_p11), [#allocation7], 4294966272  ;;  %v1312_v8 = vld [vmem:[#allocation6] sm:$0xff]  ;;  %288 = vrot.lane.b32.xlu1 %v1308_v6, %s1120_s21  ;;  %284 = vrot.lane.b32.xlu0 %v1310_v7, %s1120_s21  ;;  %v1320_v9 = vcombine.high %v1308_v6, %v1308_v6  ;;  %v1324_v10 = vcombine.high %v1310_v7, %v1310_v7  ;;  %v1326_v11 = vld [vmem:[#allocation6 + $0x10] sm:$0xff]  ;;  %s1122_s9 = smov 65   ;;  %s1123_s28 = smov 63  }
  0x57   : > { %v261_v1 = vshrl.u32 %v253_v0, 7  ;;  %v1328_v12 = vld [vmem:[#allocation6 + $0x18] sm:$0xff]  ;;  %v1332_v14 = vld [vmem:[#allocation6 + $0x8] sm:$0xff]  ;;  %s1124_s29 = smov 127   ;;  %696 = vmatprep.mubr.f32.mxu0 %v1125_v56  ;;  %767 = vmatprep.mubr.f32.mxu1 %v1125_v56  ;;  %v609_v57 = vld [vmem:[%s1612_s3] sm:$0xff]  ;;  %v1426_v59 = vand.u32 127, %v253_v0 }
  0x58   : > { %983 = vset.pattern.permute.xlu0 %v1126_v58  ;;  %vm619_vm5 = vcmask 1043456   ;;  %vm615_vm6 = vcmask 293888   ;;  %s883_s5 = sshll.u32 %s1289_s25, 5  ;;  %s900_s7 = sshll.u32 %s1174_s19, 9 }
  0x59   : > { %v1302_v2 = vsub.s32 1, %v261_v1  ;;  %v421_v3 = vsub.s32 4, %v261_v1  ;;  %v1304_v4 = vsub.s32 7, %v261_v1  ;;  %v1306_v5 = vsub.s32 3, %v261_v1  ;;  %s228_s26 = scalar_lea.vmem [#allocation8], %s883_s5  ;;  %s1565_s13 = scalar_lea.hbm %s1613_s4, %s900_s7 }
  0x5a   : > { %290 = vrot.lane.b32.xlu1 %v1320_v9, %s1120_s21  ;;  %370 = vrot.lane.b32.xlu0 %v1310_v7, %s1121_s23  ;;  %v1364_v33 = vsub.s32 0, %v261_v1  ;;  %v1367_v35 = vsub.s32 6, %v261_v1  ;;  %v1388_v44 = vsub.s32 2, %v261_v1  ;;  %v1402_v49 = vsub.s32 5, %v261_v1  ;;  %s793_s8 = sshll.u32 %s228_s26, 4  ;;  %s779_s19 = scalar_lea.sflag [#allocation5], %s1289_s25  ;;  %s1567_s8 = int_to_ptr.vmem [resolvable:$true] %s793_s8 }
  0x5b   : > { %v300_v13 = vrot.slane %v1312_v8, %v1302_v2  ;;  %v312_v15 = vrot.slane %v1328_v12, %v1302_v2  ;;  %v422_v16 = vrot.slane %v1312_v8, %v421_v3  ;;  %v430_v17 = vrot.slane %v1326_v11, %v421_v3 }
  0x5c   : > { %v434_v18 = vrot.slane %v1328_v12, %v421_v3  ;;  %v539_v19 = vrot.slane %v1326_v11, %v1304_v4  ;;  %v543_v20 = vrot.slane %v1328_v12, %v1304_v4  ;;  %v390_v21 = vrot.slane %v1332_v14, %v1306_v5 }
  0x5d   : > { %v426_v22 = vrot.slane %v1332_v14, %v421_v3  ;;  %v304_v24 = vrot.slane %v1332_v14, %v1302_v2  ;;  %v308_v25 = vrot.slane %v1326_v11, %v1302_v2  ;;  %v531_v26 = vrot.slane %v1312_v8, %v1304_v4 }
  0x5e   : > { %v440_v23 = vcombine.low %v430_v17, %v434_v18  ;;  %v535_v28 = vrot.slane %v1332_v14, %v1304_v4  ;;  %v386_v29 = vrot.slane %v1312_v8, %v1306_v5  ;;  %v394_v31 = vrot.slane %v1326_v11, %v1306_v5  ;;  %372 = vrot.lane.b32.xlu1 %v1324_v10, %s1121_s23 }
  0x5f   : > { %v439_v27 = vcombine.low %v422_v16, %v426_v22  ;;  %v398_v32 = vrot.slane %v1328_v12, %v1306_v5  ;;  %v267_v36 = vrot.slane %v1332_v14, %v1364_v33  ;;  %v263_v37 = vrot.slane %v1312_v8, %v1364_v33  ;;  %286 = vrot.lane.b32.xlu0 %v1324_v10, %s1120_s21  ;;  %s1044_s21 = scalar_lea.vmem %s1567_s8, 512 }
  0x60   : > { %v444_v30 = vmul.f32 %v440_v23, %v1308_v6  ;;  %v271_v38 = vrot.slane %v1326_v11, %v1364_v33  ;;  %v275_v39 = vrot.slane %v1328_v12, %v1364_v33  ;;  %v507_v40 = vrot.slane %v1312_v8, %v1367_v35  ;;  %p1045_p4 = scmp.ne.s32.totalorder %s1567_s8, %s1044_s21 }
  0x61   : > { %v443_v34 = vmul.f32 %v439_v27, %v1310_v7  ;;  %v519_v41 = vrot.slane %v1328_v12, %v1367_v35  ;;  %v511_v42 = vrot.slane %v1332_v14, %v1367_v35  ;;  %v515_v43 = vrot.slane %v1326_v11, %v1367_v35 }
  0x62   : > { %453 = vst [vmem:[#allocation2 + $0x50] sm:$0xf] %v444_v30  ;;  %v353_v45 = vrot.slane %v1332_v14, %v1388_v44  ;;  %376 = vrot.lane.b32.xlu1 %v1320_v9, %s1121_s23  ;;  %v349_v46 = vrot.slane %v1312_v8, %v1388_v44  ;;  %v357_v47 = vrot.slane %v1326_v11, %v1388_v44  ;;  %vm292_vm0 = vcmp.lt.s32.totalorder %v1426_v59, 64  ;;  %p1046_p6 = pnand %p1045_p4, %p1244_p12 }
  0x63   : > { %451 = vst [vmem:[#allocation2 + $0x40] sm:$0xf] %v443_v34  ;;  %374 = vrot.lane.b32.xlu0 %v1308_v6, %s1121_s23  ;;  %v361_v48 = vrot.slane %v1328_v12, %v1388_v44  ;;  %v471_v50 = vrot.slane %v1312_v8, %v1402_v49  ;;  %v483_v51 = vrot.slane %v1328_v12, %v1402_v49  ;;  %vm378_vm1 = vcmp.lt.s32.totalorder %v1426_v59, 1  ;;  %s1127_s23 = smov [#allocation8]  }
  0x64   : > { %v475_v52 = vrot.slane %v1332_v14, %v1402_v49  ;;  %v479_v53 = vrot.slane %v1326_v11, %v1402_v49  ;;  %v447_v54 = vcombine.high %v443_v34, %v443_v34  ;;  %v448_v55 = vcombine.high %v444_v30, %v444_v30  ;;  %p1047_p8 = pneg %p1046_p6 }
  0x65   : > { %vm255_vm2 = vcmp.lt.s32.totalorder %v1426_v59, 65  ;;  %vm341_vm3 = vcmp.lt.s32.totalorder %v1426_v59, 63  ;;  %vm463_vm4 = vcmp.lt.s32.totalorder %v1426_v59, 127 }
  0x66   : > { %247 = vrot.lane.b32.xlu1 %v1324_v10, %s1122_s9  ;;  %452 = vst [vmem:[#allocation2 + $0x48] sm:$0xf] %v447_v54  ;;  %454 = vst [vmem:[#allocation2 + $0x58] sm:$0xf] %v448_v55 }
  0x67   : > { %245 = vrot.lane.b32.xlu0 %v1310_v7, %s1122_s9 }
  0x6a   : > { %251 = vrot.lane.b32.xlu1 %v1320_v9, %s1122_s9 }
  0x6b   : > { %249 = vrot.lane.b32.xlu0 %v1308_v6, %s1122_s9  ;;  %s1048_s9 = sshll.u32 %s1127_s23, 4  ;;  %s1049_s9 = int_to_ptr.vmem [resolvable:$false] %s1048_s9 }
  0x6c   : > { %p1051_p10 = scmp.lt.s32.totalorder %s1567_s8, %s1049_s9 }
  0x6e   : > { %335 = vrot.lane.b32.xlu1 %v1324_v10, %s1123_s28 }
  0x6f   : > { %333 = vrot.lane.b32.xlu0 %v1310_v7, %s1123_s28 }
  0x72   : > { %339 = vrot.lane.b32.xlu1 %v1320_v9, %s1123_s28 }
  0x73   : > { %337 = vrot.lane.b32.xlu0 %v1308_v6, %s1123_s28  ;;  %s1050_s28 = scalar_lea.vmem %s1049_s9, 1024 }
  0x74   : > { %p1052_p13 = scmp.lt.s32.totalorder %s1050_s28, %s1044_s21 }
  0x76   : > { %457 = vrot.lane.b32.xlu1 %v1324_v10, %s1124_s29  ;;  %p1053_p3 = por %p1052_p13, %p1051_p10 }
  0x77   : > { %455 = vrot.lane.b32.xlu0 %v1310_v7, %s1124_s29 }
  0x78   : > { %p1054_p7 = pnand %p1053_p3, %p1047_p8 }
  0x7a   : > { %461 = vrot.lane.b32.xlu1 %v1320_v9, %s1124_s29 }
  0x7b   : > { %459 = vrot.lane.b32.xlu0 %v1308_v6, %s1124_s29 }
  0x7f   : > { %612 = vperm.xlu0 %983, %v609_v57  }
  0xc8   : > { %v289_v60 = vpop.permute.xlu1 %288  ;;  %v285_v61 = vpop.permute.xlu0 %284 }
  0xcc   : > { %v291_v62 = vpop.permute.xlu1 %290  ;;  %v371_v63 = vpop.permute.xlu0 %370 }
  0xcd   : > { %v293_v1 = vsel %vm292_vm0, %v289_v60, %v291_v62  ;;  %v296_v3 = vsel %vm292_vm0, %v291_v62, %v285_v61 }
  0xce   : > { %v313_v6 = vmul.f32 %v300_v13, %v296_v3  ;;  %v316_v0 = vmul.f32 %v312_v15, %v293_v1  ;;  %v546_v7 = vmul.f32 %v539_v19, %v293_v1  ;;  %v547_v9 = vmul.f32 %v543_v20, %v296_v3 }
  0xd0   : > { %v321_v10 = vrot.slane %v313_v6, 4  ;;  %v324_v16 = vrot.slane %v316_v0, 4  ;;  %v554_v17 = vrot.slane %v546_v7, 4  ;;  %v555_v18 = vrot.slane %v547_v9, 4  ;;  %v373_v22 = vpop.permute.xlu1 %372 }
  0xd1   : > { %v287_v23 = vpop.permute.xlu0 %286  ;;  %v381_v13 = vsel %vm378_vm1, %v371_v63, %v373_v22 }
  0xd2   : > { %v294_v15 = vsel %vm292_vm0, %v287_v23, %v289_v60  ;;  %v295_v27 = vsel %vm292_vm0, %v285_v61, %v287_v23  ;;  %329 = vst [vmem:[#allocation2] sm:$0xf0] %v321_v10  ;;  %332 = vst [vmem:[#allocation2 + $0x18] sm:$0xf0] %v324_v16  ;;  %v400_v19 = vmul.f32 %v390_v21, %v381_v13  ;;  %v886_v13 = vld [vmem:[#allocation6 + $0x30] ss:$0 sm:$0xff] }
  0xd3   : > { %562 = vst [vmem:[#allocation2 + $0x70] sm:$0xf0] %v554_v17  ;;  %563 = vst [vmem:[#allocation2 + $0x78] sm:$0xf0] %v555_v18  ;;  %v314_v20 = vmul.f32 %v304_v24, %v295_v27  ;;  %v315_v30 = vmul.f32 %v308_v25, %v294_v15  ;;  %v544_v34 = vmul.f32 %v531_v26, %v295_v27 }
  0xd4   : > { %v545_v54 = vmul.f32 %v535_v28, %v294_v15  ;;  %v408_v55 = vrot.slane %v400_v19, 4  ;;  %v377_v58 = vpop.permute.xlu1 %376 }
  0xd5   : > { %v322_v56 = vrot.slane %v314_v20, 4  ;;  %v323_v57 = vrot.slane %v315_v30, 4  ;;  %v552_v21 = vrot.slane %v544_v34, 4  ;;  %v375_v60 = vpop.permute.xlu0 %374  ;;  %v382_v24 = vsel %vm378_vm1, %v377_v58, %v371_v63 }
  0xd6   : > { %v553_v61 = vrot.slane %v545_v54, 4  ;;  %v379_v2 = vsel %vm378_vm1, %v375_v60, %v377_v58  ;;  %v380_v25 = vsel %vm378_vm1, %v373_v22, %v375_v60  ;;  %416 = vst [vmem:[#allocation2 + $0x28] sm:$0xf0] %v408_v55  ;;  %v399_v4 = vmul.f32 %v386_v29, %v382_v24  ;;  %v884_v22 = vld [vmem:[#allocation6 + $0x20] ss:$0 sm:$0xff] }
  0xd7   : > { %330 = vst [vmem:[#allocation2 + $0x8] sm:$0xf0] %v322_v56  ;;  %331 = vst [vmem:[#allocation2 + $0x10] sm:$0xf0] %v323_v57  ;;  %v401_v26 = vmul.f32 %v394_v31, %v380_v25  ;;  %v402_v28 = vmul.f32 %v398_v32, %v379_v2 }
  0xd8   : > { %560 = vst [vmem:[#allocation2 + $0x60] sm:$0xf0] %v552_v21  ;;  %561 = vst [vmem:[#allocation2 + $0x68] sm:$0xf0] %v553_v61  ;;  %v407_v62 = vrot.slane %v399_v4, 4  ;;  %v248_v3 = vpop.permute.xlu1 %247 }
  0xd9   : > { %v409_v63 = vrot.slane %v401_v26, 4  ;;  %v410_v1 = vrot.slane %v402_v28, 4  ;;  %v246_v6 = vpop.permute.xlu0 %245 }
  0xda   : > { %v258_v0 = vsel %vm255_vm2, %v246_v6, %v248_v3  ;;  %415 = vst [vmem:[#allocation2 + $0x20] sm:$0xf0] %v407_v62 }
  0xdb   : > { %417 = vst [vmem:[#allocation2 + $0x30] sm:$0xf0] %v409_v63  ;;  %418 = vst [vmem:[#allocation2 + $0x38] sm:$0xf0] %v410_v1  ;;  %v277_v29 = vmul.f32 %v267_v36, %v258_v0  ;;  %v520_v5 = vmul.f32 %v507_v40, %v258_v0 }
  0xdc   : > { %v252_v31 = vpop.permute.xlu1 %251 }
  0xdd   : > { %281 = vst [vmem:[#allocation2 + $0x8] sm:$0xf] %v277_v29  ;;  %524 = vst [vmem:[#allocation2 + $0x60] sm:$0xf] %v520_v5  ;;  %v250_v32 = vpop.permute.xlu0 %249  ;;  %v259_v7 = vsel %vm255_vm2, %v252_v31, %v246_v6 }
  0xde   : > { %v256_v9 = vsel %vm255_vm2, %v250_v32, %v252_v31  ;;  %v257_v10 = vsel %vm255_vm2, %v248_v3, %v250_v32  ;;  %v276_v36 = vmul.f32 %v263_v37, %v259_v7  ;;  %v523_v40 = vmul.f32 %v519_v41, %v259_v7 }
  0xdf   : > { %v278_v16 = vmul.f32 %v271_v38, %v257_v10  ;;  %v279_v17 = vmul.f32 %v275_v39, %v256_v9  ;;  %v521_v18 = vmul.f32 %v511_v42, %v257_v10  ;;  %v522_v37 = vmul.f32 %v515_v43, %v256_v9  ;;  %v887_v42 = vld [vmem:[#allocation6 + $0x38] ss:$0 sm:$0xff]  ;;  %v885_v43 = vld [vmem:[#allocation6 + $0x28] ss:$0 sm:$0xff] }
  0xe0   : > { %280 = vst [vmem:[#allocation2] sm:$0xf] %v276_v36  ;;  %527 = vst [vmem:[#allocation2 + $0x78] sm:$0xf] %v523_v40  ;;  %v336_v41 = vpop.permute.xlu1 %335 }
  0xe1   : > { %282 = vst [vmem:[#allocation2 + $0x10] sm:$0xf] %v278_v16  ;;  %283 = vst [vmem:[#allocation2 + $0x18] sm:$0xf] %v279_v17  ;;  %v334_v23 = vpop.permute.xlu0 %333 }
  0xe2   : > { %525 = vst [vmem:[#allocation2 + $0x68] sm:$0xf] %v521_v18  ;;  %526 = vst [vmem:[#allocation2 + $0x70] sm:$0xf] %v522_v37  ;;  %v344_v33 = vsel %vm341_vm3, %v334_v23, %v336_v41  ;;  %v588_v18 = vld [vmem:[%s1610_s1] sm:$0xff] }
  0xe3   : > { %v363_v38 = vmul.f32 %v353_v45, %v344_v33  ;;  %v580_v39 = vmul.f32 %v884_v22, %v344_v33 }
  0xe4   : > { %v340_v35 = vpop.permute.xlu1 %339  ;;  %v590_v58 = vld [vmem:[#allocation2 + $0x8] sm:$0xff]  ;;  %v601_v10 = vld [vmem:[#allocation2 + $0x60] sm:$0xff] }
  0xe5   : > { %367 = vst [vmem:[#allocation2 + $0x28] sm:$0xf] %v363_v38  ;;  %584 = vst [vmem:[#allocation2 + $0x80] sm:$0xf] %v580_v39  ;;  %v338_v15 = vpop.permute.xlu0 %337  ;;  %v345_v27 = vsel %vm341_vm3, %v340_v35, %v334_v23 }
  0xe6   : > { %v342_v19 = vsel %vm341_vm3, %v338_v15, %v340_v35  ;;  %v343_v20 = vsel %vm341_vm3, %v336_v41, %v338_v15  ;;  %v362_v45 = vmul.f32 %v349_v46, %v345_v27  ;;  %v583_v30 = vmul.f32 %v887_v42, %v345_v27 }
  0xe7   : > { %v364_v34 = vmul.f32 %v357_v47, %v343_v20  ;;  %v365_v54 = vmul.f32 %v361_v48, %v342_v19  ;;  %v581_v55 = vmul.f32 %v885_v43, %v343_v20  ;;  %v582_v56 = vmul.f32 %v886_v13, %v342_v19  ;;  %v589_v28 = vld [vmem:[#allocation2] sm:$0xff]  ;;  %v604_v14 = vld [vmem:[#allocation2 + $0x78] sm:$0xff] }
  0xe8   : > { %366 = vst [vmem:[#allocation2 + $0x20] sm:$0xf] %v362_v45  ;;  %587 = vst [vmem:[#allocation2 + $0x98] sm:$0xf] %v583_v30  ;;  %v458_v57 = vpop.permute.xlu1 %457  ;;  %v592_v29 = vld [vmem:[#allocation2 + $0x18] sm:$0xff]  ;;  %v591_v12 = vld [vmem:[#allocation2 + $0x10] sm:$0xff] }
  0xe9   : > { %368 = vst [vmem:[#allocation2 + $0x30] sm:$0xf] %v364_v34  ;;  %369 = vst [vmem:[#allocation2 + $0x38] sm:$0xf] %v365_v54  ;;  %v456_v21 = vpop.permute.xlu0 %455  ;;  %v602_v11 = vld [vmem:[#allocation2 + $0x68] sm:$0xff] }
  0xea   : > { %585 = vst [vmem:[#allocation2 + $0x88] sm:$0xf] %v581_v55  ;;  %586 = vst [vmem:[#allocation2 + $0x90] sm:$0xf] %v582_v56  ;;  %v466_v46 = vsel %vm463_vm4, %v456_v21, %v458_v57 }
  0xeb   : > { %v484_v47 = vmul.f32 %v471_v50, %v466_v46 }
  0xec   : > { %v594_v44 = vld [vmem:[#allocation2 + $0x28] sm:$0xff]  ;;  %v462_v60 = vpop.permute.xlu1 %461  ;;  %v605_v37 = vld [vmem:[#allocation2 + $0x80] sm:$0xf] }
  0xed   : > { %v492_v48 = vrot.slane %v484_v47, 4  ;;  %v460_v61 = vpop.permute.xlu0 %459  ;;  %v901_v24 = vpack.c.bf16 %v594_v44, %v590_v58  ;;  %v467_v2 = vsel %vm463_vm4, %v462_v60, %v456_v21 }
  0xee   : > { %v464_v25 = vsel %vm463_vm4, %v460_v61, %v462_v60  ;;  %v465_v4 = vsel %vm463_vm4, %v458_v57, %v460_v61  ;;  %v487_v8 = vmul.f32 %v483_v51, %v467_v2 }
  0xef   : > { %500 = vst [vmem:[#allocation2 + $0x40] sm:$0xf0] %v492_v48  ;;  %v485_v50 = vmul.f32 %v475_v52, %v465_v4  ;;  %v486_v26 = vmul.f32 %v479_v53, %v464_v25  ;;  %902 = vmatprep.subr.bf16.mxu0 %v901_v24  ;;  %v593_v62 = vld [vmem:[#allocation2 + $0x20] sm:$0xff]  ;;  %v603_v52 = vld [vmem:[#allocation2 + $0x70] sm:$0xff]  ;;  %v608_v17 = vld [vmem:[#allocation2 + $0x98] sm:$0xf] }
  0xf0   : > { %v596_v63 = vld [vmem:[#allocation2 + $0x38] sm:$0xff]  ;;  %v595_v1 = vld [vmem:[#allocation2 + $0x30] sm:$0xff]  ;;  %v495_v59 = vrot.slane %v487_v8, 4  ;;  %v903_v0 = vpack.c.bf16 %v593_v62, %v589_v28 }
  0xf1   : > { %v493_v3 = vrot.slane %v485_v50, 4  ;;  %v494_v6 = vrot.slane %v486_v26, 4  ;;  %v909_v51 = vpack.c.bf16 %v596_v63, %v592_v29  ;;  %v911_v5 = vpack.c.bf16 %v595_v1, %v591_v12  ;;  %v606_v16 = vld [vmem:[#allocation2 + $0x88] sm:$0xf]  ;;  %v607_v22 = vld [vmem:[#allocation2 + $0x90] sm:$0xf] }
  0xf2   : > { %503 = vst [vmem:[#allocation2 + $0x58] sm:$0xf0] %v495_v59  ;;  %904 = vmatpush1.bf16.msra.mxu0 %v903_v0 }
  0xf3   : > { %501 = vst [vmem:[#allocation2 + $0x48] sm:$0xf0] %v493_v3  ;;  %502 = vst [vmem:[#allocation2 + $0x50] sm:$0xf0] %v494_v6  ;;  %910 = vmatprep.subr.bf16.mxu1 %v909_v51 }
  0xf4   : > { %912 = vmatpush1.bf16.msra.mxu1 %v911_v5 }
  0xf6   : > { %v597_v49 = vld [vmem:[#allocation2 + $0x40] sm:$0xff] }
  0xf7   : > { %v907_v40 = vpack.c.bf16 %v601_v10, %v597_v49 }
  0xf9   : > { %v600_v31 = vld [vmem:[#allocation2 + $0x58] sm:$0xff] }
  0xfa   : > { %v598_v53 = vld [vmem:[#allocation2 + $0x48] sm:$0xff]  ;;  %v599_v32 = vld [vmem:[#allocation2 + $0x50] sm:$0xff]  ;;  %v913_v9 = vpack.c.bf16 %v604_v14, %v600_v31 }
  0xfb   : > { %v905_v7 = vpack.c.bf16 %v602_v11, %v598_v53  ;;  %v915_v36 = vpack.c.bf16 %v603_v52, %v599_v32 }
  0xfc   : > { %914 = vmatprep.subr.bf16.mxu1 %v913_v9 }
  0xfd   : > { %906 = vmatprep.subr.bf16.mxu0 %v905_v7  ;;  %916 = vmatpush1.bf16.msra.mxu1 %v915_v36 }
  0xfe   : > { %908 = vmatpush1.bf16.msra.mxu0 %v907_v40  ;;  %891 = vmatprep.subr.msk.mxu1 %vm619_vm5, %v608_v17  ;;  %v613_v41 = vpop.permute.xlu0 %612 }
  0xff   : > { %888 = vmatprep.subr.msk.mxu0 %vm619_vm5, %v606_v16 }
 0x101   : > { %892 = vmatpush1.msk.msra.mxu1 %vm619_vm5, %v607_v22 }
 0x102   : > { %889 = vmatpush1.msk.msra.mxu0 %vm619_vm5, %v605_v37  ;;  %893 = vmatmul.mubr.msk.f32.vlgmr.msra.gmra.mrb[0].mxu1 %vm615_vm6, %v588_v18 }
 0x103   : > { %890 = vmatmul.mubr.msk.f32.vlgmr.msra.gmra.mrb[0].mxu0 %vm615_vm6, %v588_v18 }
 0x1d5   : > { %v769_v33 = vpop.f32.mrb[0].mxu1 }
 0x1d6   : > { %v698_v23 = vpop.f32.mrb[0].mxu0  ;;  %v770_v39 = vadd.f32 %v769_v33, %v613_v41  ;;  %v771_v35 = vpop.f32.mrb[1].mxu1 }
 0x1d7   : > { %v699_v38 = vadd.f32 %v698_v23, %v613_v41  ;;  %v700_v42 = vpop.f32.mrb[1].mxu0  ;;  %v772_v13 = vadd.f32 %v771_v35, %v613_v41 }
 0x1d8   : > { %v701_v43 = vadd.f32 %v700_v42, %v613_v41  ;;  %776 = vst [vmem:[%s228_s26 + $0x10] sm:$0xff] %v770_v39 }
 0x1d9   : > { %774 = vst [vmem:[%s228_s26] sm:$0xff] %v699_v38  ;;  %777 = vst [vmem:[%s228_s26 + $0x18] sm:$0xff] %v772_v13 }
 0x1da   : > { %775 = vst [vmem:[%s228_s26 + $0x8] sm:$0xff] %v701_v43 }
 0x1db   : > { %1057 = shalt.err (!%p1054_p7)
}
 0x1dc   : > { %s1058_s25 = scalar_lea.hbm %s1565_s13, 512  ;;  %s1062_s14 = scalar_lea.hbm %s1613_s4, 1024 }
 0x1dd   : > { %p1059_p9 = scmp.ne.s32.totalorder %s1565_s13, %s1058_s25  ;;  %p1063_p0 = scmp.lt.u32.totalorder %s1565_s13, %s1613_s4 }
 0x1de   : > { %p1064_p1 = scmp.lt.u32.totalorder %s1062_s14, %s1058_s25  ;;  %p1066_p4 = scmp.lt.u32.totalorder %s1058_s25, %s1565_s13 }
 0x1df   : > { %p1060_p2 = pnand %p1059_p9, %p1244_p12 }
 0x1e0   : > { %p1065_p11 = por %p1064_p1, %p1063_p0 }
 0x1e1   : > { %p1061_p5 = pneg %p1060_p2 }
 0x1e2   : > { %p1067_p6 = por %p1066_p4, %p1065_p11 }
 0x1e4   : > { %p1068_p8 = pnand %p1067_p6, %p1061_p5 }
 0x1e6   : > { %1071 = shalt.err (!%p1068_p8)
}
 0x1e7   : > { %923 = dma.vmem_to_hbm [thread:$0]  (%p1244_p12), %s1567_s8, 512, %s1565_s13, %s779_s19  }
 0x1e8 PF: > { %s805_s5 = sand.u32 1, %s1102_s15   ;;  %p1628_p10 = scmp.ne.s32.totalorder %s1618_s22, 0 }
 0x1e9   : > { %p1629_p13 = scmp.ge.s32.totalorder %s1114_s18, 2  ;;  %s806_s7 = scalar_lea.sflag [#allocation5], %s805_s5 }
 0x1eb   : > { %p934_p3 = pnand %p1629_p13, %p1628_p10 }
 0x1ed   : > { %1097 = dma.done.wait (!%p934_p3), %s806_s7, 512  }
 0x1ee   : > { %1099 = vsyncadd (!%p934_p3), %s806_s7, 4294966784  ;;  %p18_p7 = scmp.ge.s32.totalorder %s1209_s27, 4   ;;  %s1630_s15 = smov %s1106_s16 }
 0x1ef   : > { %s1631_s16 = smov %s1110_s17  ;;  %s1632_s17 = smov %s1240_s24 }
 0x1f0   : > { %s1633_s18 = smov %s1209_s27  ;;  %20 = sbr.rel (!%p18_p7) target bundleno = 6 (0x6), region = 85 }
 0x1f7   :  { %811 = vsyncpa [#allocation4], 1 }
 0x1f8   :  { %813 = vsyncpa [#allocation4 + $0x1], 1 }
 0x1f9   :  { %814 = vsyncpa [#allocation7], 1 }
 0x1fa   :  { %815 = vsyncpa [#allocation5], 1 }
 0x1fb   :  { %817 = vsyncpa [#allocation5 + $0x1], 1 }

</bundles_post_ra>
